<compile_context>
chip_gen: v7x
topology: tpu7x:2x2x1
jax: 0.10.0
libtpu: 0.0.40
codegen_flags: <defaults>
</compile_context>

<pallas_src>
import math

import numpy as np
import jax
import jax.numpy as jnp
from jax.experimental import pallas as pl
from jax.experimental.pallas import tpu as pltpu


_LANE_DIM = 384          # 3 * 128: multiple of lane width (128) and channels (6)
_MAX_BLOCK_ROWS = 2048   # 2048 * 384 * 4 B = 3 MiB per f32 pipeline buffer

# Channel pattern repeats identically on every 384-wide lane row (384 % 6 == 0).
# Row 0: rotation-channel mask (0/1).  Row 1: 2*pi on rotation channels, else 0.
_MASK_ROW = np.tile(np.array([0.0, 0.0, 0.0, 1.0, 1.0, 1.0], dtype=np.float32),
                    _LANE_DIM // 6)
_MASK_TABLE = np.stack([_MASK_ROW, np.float32(2.0 * math.pi) * _MASK_ROW]
                       ).astype(np.float32)          # (2, 384)


def _round_up(x, m):
    return ((x + m - 1) // m) * m


def _sublane_multiple(dtype):
    # 8 rows for 4-byte dtypes, 16 for 2-byte, 32 for 1-byte.
    return max(8, 32 // jnp.dtype(dtype).itemsize)


def _num_tensorcores():
    # 2-way "parallel" core axis only helps on multi-TC-per-device chips (v7x).
    try:
        kind = jax.devices()[0].device_kind.lower()
    except Exception:
        return 1
    return 2 if ("v7" in kind or "7x" in kind) else 1


def _wmse_kernel(mask_ref, pred_ref, target_ref, out_ref):
    """Accumulates per-core (1, 2, 384) column sums: row 0 trans, row 1 rot."""
    i = pl.program_id(1)  # streaming ("arbitrary") axis

    @pl.when(i == 0)
    def _init():
        out_ref[...] = jnp.zeros_like(out_ref)

    p = pred_ref[...].astype(jnp.float32)     # (block_rows, 384)
    t = target_ref[...].astype(jnp.float32)

    pi = jnp.float32(math.pi)
    rot_row = mask_ref[0:1, :]       # (1, 384): 1.0 on rotation channels
    two_pi_row = mask_ref[1:2, :]    # (1, 384): 2*pi on rotation channels else 0

    def wrap(a):
        # Subtracting/adding 0 on translation channels leaves them unchanged,
        # so no per-element channel compare / outer select is needed.
        a = jnp.where(a > pi, a - two_pi_row, a)
        a = jnp.where(a < -pi, a + two_pi_row, a)
        return a

    sq = (wrap(p) - wrap(t)) ** 2                         # (block_rows, 384)

    # Shared reduction: one column sum, rot/trans split on the (1,384) row.
    col = jnp.sum(sq, axis=0, keepdims=True)              # (1, 384)
    rot_col = col * rot_row
    trans_col = col - rot_col                             # exact (rot lanes -> 0)

    out_ref[...] += jnp.concatenate([trans_col, rot_col], axis=0)[None]


def weighted_mse_loss(pred, target, trans_weight=1.0, rot_weight=100.0):
    """Pallas implementation of WeightedMSELoss.forward.

    pred, target: (B, T, 6) arrays (float32 or bfloat16; math is done in f32).
    Returns (total_loss, trans_loss, rot_loss) as float32 scalars.
    """
    assert pred.shape == target.shape and pred.shape[-1] == 6
    B, T, C = pred.shape
    n_total = B * T * C
    n_half = B * T * 3   # element count of each of the trans / rot halves

    sub = max(_sublane_multiple(pred.dtype), _sublane_multiple(target.dtype))
    n_cores = _num_tensorcores()

    rows = pl.cdiv(n_total, _LANE_DIM)
    block_rows = min(_MAX_BLOCK_ROWS,
                     _round_up(max(1, pl.cdiv(rows, n_cores)), sub))
    rows_padded = _round_up(rows, n_cores * block_rows)
    tiles_per_core = rows_padded // (n_cores * block_rows)
    n_padded = rows_padded * _LANE_DIM

    def to_tiles(x):
        flat = x.reshape(-1)          # zero-cost row-major view of (B, T, 6)
        if n_padded != n_total:
            # zero padding contributes (0 - 0)^2 == 0 to both sums;
            # allow_input_fusion lets this fuse into the kernel operand.
            flat = jnp.pad(flat, (0, n_padded - n_total))
        return flat.reshape(rows_padded, _LANE_DIM)

    pred2d = to_tiles(pred)
    target2d = to_tiles(target)
    mask_tbl = jnp.asarray(_MASK_TABLE)                    # (2, 384) f32

    bytes_in = n_padded * (jnp.dtype(pred.dtype).itemsize
                           + jnp.dtype(target.dtype).itemsize)
    cost = pl.CostEstimate(
        flops=16 * n_padded,
        transcendentals=0,
        bytes_accessed=bytes_in + (n_cores * 2 + 2) * _LANE_DIM * 4,
    )

    partials = pl.pallas_call(
        _wmse_kernel,
        out_shape=jax.ShapeDtypeStruct((n_cores, 2, _LANE_DIM), jnp.float32),
        grid=(n_cores, tiles_per_core),
        in_specs=[
            pl.BlockSpec((2, _LANE_DIM), lambda c, i: (0, 0)),
            pl.BlockSpec((block_rows, _LANE_DIM),
                         lambda c, i: (c * tiles_per_core + i, 0)),
            pl.BlockSpec((block_rows, _LANE_DIM),
                         lambda c, i: (c * tiles_per_core + i, 0)),
        ],
        out_specs=pl.BlockSpec((1, 2, _LANE_DIM), lambda c, i: (c, 0, 0)),
        compiler_params=pltpu.CompilerParams(
            dimension_semantics=("parallel", "arbitrary"),
            vmem_limit_bytes=32 * 1024 * 1024,
            allow_input_fusion=[False, True, True],
        ),
        cost_estimate=cost,
    )(mask_tbl, pred2d, target2d)

    trans_sum = jnp.sum(partials[:, 0, :])
    rot_sum = jnp.sum(partials[:, 1, :])

    trans_loss = (trans_sum / jnp.float32(n_half)) * jnp.float32(trans_weight)
    rot_loss = (rot_sum / jnp.float32(n_half)) * jnp.float32(rot_weight)
    total_loss = trans_loss + rot_loss
    return total_loss, trans_loss, rot_loss


def _reference(pred, target, trans_weight=1.0, rot_weight=100.0):
    pi = math.pi

    def norm(a):
        a = jnp.where(a > pi, a - 2 * pi, a)
        a = jnp.where(a < -pi, a + 2 * pi, a)
        return a

    pred_rot = norm(pred[:, :, 3:])
    target_rot = norm(target[:, :, 3:])
    trans_loss = jnp.mean((pred[:, :, :3] - target[:, :, :3]) ** 2) * trans_weight
    rot_loss = jnp.mean((pred_rot - target_rot) ** 2) * rot_weight
    return trans_loss + rot_loss, trans_loss, rot_loss


if __name__ == "__main__":
    key = jax.random.PRNGKey(0)
    k1, k2 = jax.random.split(key)
    B, T = 2, 8  # small sequence of 6-DoF pose deltas
    # scale up so some rotation deltas fall outside [-pi, pi] (exercise wrapping)
    pred = jax.random.normal(k1, (B, T, 6), dtype=jnp.float32) * 4.0
    target = jax.random.normal(k2, (B, T, 6), dtype=jnp.float32) * 4.0

    total, trans, rot = weighted_mse_loss(pred, target,
                                          trans_weight=1.0, rot_weight=100.0)
    jax.block_until_ready(total)

    ref_total, ref_trans, ref_rot = _reference(pred, target, 1.0, 100.0)
    assert jnp.allclose(total, ref_total, rtol=1e-5, atol=1e-5)
    assert jnp.allclose(trans, ref_trans, rtol=1e-5, atol=1e-5)
    assert jnp.allclose(rot, ref_rot, rtol=1e-5, atol=1e-5)

    print("KERNEL_OK")
</pallas_src>

<mosaic_0001>
module attributes {stable_mosaic.version = 11 : i64} {
  func.func @_wmse_kernel(%arg0: i32, %arg1: i32, %arg2: memref<2x384xf32, #tpu.memory_space<vmem>>, %arg3: memref<8x384xf32, #tpu.memory_space<vmem>>, %arg4: memref<8x384xf32, #tpu.memory_space<vmem>>, %arg5: memref<1x2x384xf32, #tpu.memory_space<vmem>>) attributes {dimension_semantics = [#tpu.dimension_semantics<parallel>, #tpu.dimension_semantics<arbitrary>], iteration_bounds = array<i64: 1, 1>, scalar_prefetch = 0 : i64, scratch_operands = 0 : i64, tpu.core_type = #tpu.core_type<tc>, window_params = [{pipeline_mode = #tpu.pipeline_mode<synchronous>, transform_indices = @transform_0, window_bounds = array<i64: 2, 384>}, {transform_indices = @transform_1, window_bounds = array<i64: 8, 384>}, {transform_indices = @transform_2, window_bounds = array<i64: 8, 384>}, {transform_indices = @transform_3, window_bounds = array<i64: 1, 2, 384>}]} {
    %c0_i32 = arith.constant 0 : i32
    %0 = arith.cmpi eq, %arg1, %c0_i32 : i32
    %1 = arith.extui %0 : i1 to i32
    %c0_i32_0 = arith.constant 0 : i32
    %2 = arith.cmpi ne, %1, %c0_i32_0 : i32
    scf.if %2 {
      %cst_19 = arith.constant 0.000000e+00 : f32
      %40 = vector.broadcast %cst_19 : f32 to vector<1x2x384xf32>
      %c0_20 = arith.constant 0 : index
      %c0_21 = arith.constant 0 : index
      %c0_22 = arith.constant 0 : index
      %41 = vector.load %arg5[%c0_20, %c0_21, %c0_22] : memref<1x2x384xf32, #tpu.memory_space<vmem>>, vector<1x2x384xf32>
      tpu.vector_store %arg5[%c0_20, %c0_21, %c0_22], %40 {strides = array<i32>} : memref<1x2x384xf32, #tpu.memory_space<vmem>>, vector<1x2x384xf32>,
    } else {
    }
    %c0 = arith.constant 0 : index
    %c0_1 = arith.constant 0 : index
    %3 = vector.load %arg3[%c0, %c0_1] : memref<8x384xf32, #tpu.memory_space<vmem>>, vector<8x384xf32>
    %c0_2 = arith.constant 0 : index
    %c0_3 = arith.constant 0 : index
    %4 = vector.load %arg4[%c0_2, %c0_3] : memref<8x384xf32, #tpu.memory_space<vmem>>, vector<8x384xf32>
    %c0_4 = arith.constant 0 : index
    %c0_5 = arith.constant 0 : index
    %5 = vector.load %arg2[%c0_4, %c0_5] : memref<2x384xf32, #tpu.memory_space<vmem>>, vector<1x384xf32>
    %c1 = arith.constant 1 : index
    %c0_6 = arith.constant 0 : index
    %6 = vector.load %arg2[%c1, %c0_6] : memref<2x384xf32, #tpu.memory_space<vmem>>, vector<1x384xf32>
    %cst = arith.constant 3.14159274 : f32
    %7 = vector.broadcast %cst : f32 to vector<8x384xf32>
    %8 = arith.cmpf ogt, %3, %7 : vector<8x384xf32>
    %9 = vector.broadcast %6 : vector<1x384xf32> to vector<8x384xf32>
    %10 = arith.subf %3, %9 : vector<8x384xf32>
    %11 = arith.select %8, %10, %3 : vector<8x384xi1>, vector<8x384xf32>
    %cst_7 = arith.constant 0.000000e+00 : f32
    %cst_8 = arith.constant 3.14159274 : f32
    %12 = arith.subf %cst_7, %cst_8 : f32
    %13 = vector.broadcast %12 : f32 to vector<8x384xf32>
    %14 = arith.cmpf olt, %11, %13 : vector<8x384xf32>
    %15 = vector.broadcast %6 : vector<1x384xf32> to vector<8x384xf32>
    %16 = arith.addf %11, %15 : vector<8x384xf32>
    %17 = arith.select %14, %16, %11 : vector<8x384xi1>, vector<8x384xf32>
    %cst_9 = arith.constant 3.14159274 : f32
    %18 = vector.broadcast %cst_9 : f32 to vector<8x384xf32>
    %19 = arith.cmpf ogt, %4, %18 : vector<8x384xf32>
    %20 = vector.broadcast %6 : vector<1x384xf32> to vector<8x384xf32>
    %21 = arith.subf %4, %20 : vector<8x384xf32>
    %22 = arith.select %19, %21, %4 : vector<8x384xi1>, vector<8x384xf32>
    %cst_10 = arith.constant 0.000000e+00 : f32
    %cst_11 = arith.constant 3.14159274 : f32
    %23 = arith.subf %cst_10, %cst_11 : f32
    %24 = vector.broadcast %23 : f32 to vector<8x384xf32>
    %25 = arith.cmpf olt, %22, %24 : vector<8x384xf32>
    %26 = vector.broadcast %6 : vector<1x384xf32> to vector<8x384xf32>
    %27 = arith.addf %22, %26 : vector<8x384xf32>
    %28 = arith.select %25, %27, %22 : vector<8x384xi1>, vector<8x384xf32>
    %29 = arith.subf %17, %28 : vector<8x384xf32>
    %30 = arith.mulf %29, %29 : vector<8x384xf32>
    %cst_12 = arith.constant dense<0.000000e+00> : vector<384xf32>
    %31 = vector.multi_reduction <add>, %30, %cst_12 [0] : vector<8x384xf32> to vector<384xf32>
    %32 = vector.shape_cast %31 : vector<384xf32> to vector<1x384xf32>
    %33 = arith.mulf %32, %5 : vector<1x384xf32>
    %34 = arith.subf %32, %33 : vector<1x384xf32>
    %c0_13 = arith.constant 0 : index
    %c0_14 = arith.constant 0 : index
    %c0_15 = arith.constant 0 : index
    %35 = vector.load %arg5[%c0_13, %c0_14, %c0_15] : memref<1x2x384xf32, #tpu.memory_space<vmem>>, vector<1x2x384xf32>
    %36 = tpu.concatenate %34, %33 in 0 : vector<1x384xf32>, vector<1x384xf32> -> vector<2x384xf32>
    %37 = vector.shape_cast %36 : vector<2x384xf32> to vector<1x2x384xf32>
    %38 = arith.addf %35, %37 : vector<1x2x384xf32>
    %c0_16 = arith.constant 0 : index
    %c0_17 = arith.constant 0 : index
    %c0_18 = arith.constant 0 : index
    %39 = vector.load %arg5[%c0_16, %c0_17, %c0_18] : memref<1x2x384xf32, #tpu.memory_space<vmem>>, vector<1x2x384xf32>
    tpu.vector_store %arg5[%c0_16, %c0_17, %c0_18], %38 {strides = array<i32>} : memref<1x2x384xf32, #tpu.memory_space<vmem>>, vector<1x2x384xf32>,
    return
  }
  func.func @transform_0(%arg0: i32, %arg1: i32) -> (i32, i32) {
    %c0_i32 = arith.constant 0 : i32
    %c0_i32_0 = arith.constant 0 : i32
    %c0_i32_1 = arith.constant 0 : i32
    return %c0_i32, %c0_i32_0 : i32, i32
  }
  func.func @transform_1(%arg0: i32, %arg1: i32) -> (i32, i32) {
    %c1_i32 = arith.constant 1 : i32
    %0 = arith.muli %arg0, %c1_i32 : i32
    %1 = arith.addi %0, %arg1 : i32
    %c0_i32 = arith.constant 0 : i32
    %c0_i32_0 = arith.constant 0 : i32
    return %1, %c0_i32 : i32, i32
  }
  func.func @transform_2(%arg0: i32, %arg1: i32) -> (i32, i32) {
    %c1_i32 = arith.constant 1 : i32
    %0 = arith.muli %arg0, %c1_i32 : i32
    %1 = arith.addi %0, %arg1 : i32
    %c0_i32 = arith.constant 0 : i32
    %c0_i32_0 = arith.constant 0 : i32
    return %1, %c0_i32 : i32, i32
  }
  func.func @transform_3(%arg0: i32, %arg1: i32) -> (i32, i32, i32) {
    %c0_i32 = arith.constant 0 : i32
    %c0_i32_0 = arith.constant 0 : i32
    %c0_i32_1 = arith.constant 0 : i32
    return %arg0, %c0_i32, %c0_i32_0 : i32, i32, i32
  }
}

</mosaic_0001>

<bundles_post_ra>
// kernel: tpu_custom_call.1
= control target key start
LH: loop header
LB: loop body
LE: loop exit
PB: predicated region body
PF: predicated region fallthrough
CT: control target
= control target key end

     0   :  { %8 = vsyncpa [#allocation3], 0  ;;  %s416_s0 = inlined_call_operand.hbm [shape: f32[2,384], index: 0, kind: input, shape index: {}]   ;;  %s417_s1 = inlined_call_operand.hbm [shape: f32[8,384], index: 1, kind: input, shape index: {}]   ;;  %s418_s2 = inlined_call_operand.hbm [shape: f32[8,384], index: 2, kind: input, shape index: {}]   ;;  %s419_s3 = inlined_call_operand.hbm [shape: f32[1,2,384], index: 3, kind: output, shape index: {}]  }
   0x1   :  { %9 = vsyncpa [#allocation6], 0 }
   0x2   :  { %10 = vsyncpa [#allocation4], 0  ;;  %s324_s12 = smov [#allocation5]   ;;  %s325_s14 = smov [#allocation2]  }
   0x3   :  { %s31_s13 = sshll.u32 %s324_s12, 4  ;;  %s17_s15 = sshll.u32 %s325_s14, 4  ;;  %s32_s13 = int_to_ptr.vmem [resolvable:$true] %s31_s13  ;;  %s18_s15 = int_to_ptr.vmem [resolvable:$true] %s17_s15 }
   0x4   :  { %s230_s18 = scalar_lea.hbm %s417_s1, 384 }
   0x5   :  { %p231_p0 = scmp.ne.s32.totalorder %s417_s1, %s230_s18  ;;  %p234_p1 = scmp.lt.u32.totalorder %s230_s18, %s417_s1 }
   0x7   :  { %p236_p2 = pnand %p234_p1, %p231_p0 }
   0x9   :  { %239 = shalt.err (!%p236_p2)
}
   0xa   :  { %s240_s23 = scalar_lea.vmem %s32_s13, 384  ;;  %p245_p4 = scmp.lt.s32.totalorder %s32_s13, %s32_s13 }
   0xb   :  { %p241_p3 = scmp.ne.s32.totalorder %s32_s13, %s240_s23  ;;  %p246_p5 = scmp.lt.s32.totalorder %s240_s23, %s240_s23 }
   0xd   :  { %p247_p6 = por %p246_p5, %p245_p4 }
   0xf   :  { %p248_p7 = pnand %p247_p6, %p241_p3 }
  0x11   :  { %251 = shalt.err (!%p248_p7)
}
  0x12   :  { %34 = dma.hbm_to_vmem [thread:$0]  %s417_s1, 384, %s32_s13, [#allocation6]  }
  0x13   :  { %s252_s28 = scalar_lea.hbm %s416_s0, 96 }
  0x14   :  { %p253_p8 = scmp.ne.s32.totalorder %s416_s0, %s252_s28  ;;  %p256_p9 = scmp.lt.u32.totalorder %s252_s28, %s416_s0 }
  0x16   :  { %p258_p10 = pnand %p256_p9, %p253_p8 }
  0x18   :  { %261 = shalt.err (!%p258_p10)
}
  0x19   :  { %s262_s6 = scalar_lea.vmem %s18_s15, 96  ;;  %p267_p12 = scmp.lt.s32.totalorder %s18_s15, %s18_s15 }
  0x1a   :  { %p263_p11 = scmp.ne.s32.totalorder %s18_s15, %s262_s6  ;;  %p268_p13 = scmp.lt.s32.totalorder %s262_s6, %s262_s6 }
  0x1c   :  { %p269_p0 = por %p268_p13, %p267_p12 }
  0x1e   :  { %p270_p1 = pnand %p269_p0, %p263_p11 }
  0x20   :  { %273 = shalt.err (!%p270_p1)
}
  0x21   :  { %20 = dma.hbm_to_vmem [thread:$0]  %s416_s0, 96, %s18_s15, [#allocation3]  }
  0x22   :  { %s326_s8 = smov [#allocation7]   ;;  %s274_s12 = scalar_lea.hbm %s418_s2, 384 }
  0x23   :  { %s45_s9 = sshll.u32 %s326_s8, 4  ;;  %p275_p2 = scmp.ne.s32.totalorder %s418_s2, %s274_s12  ;;  %s46_s9 = int_to_ptr.vmem [resolvable:$true] %s45_s9 }
  0x24   :  { %p278_p3 = scmp.lt.u32.totalorder %s274_s12, %s418_s2 }
  0x26   :  { %p280_p4 = pnand %p278_p3, %p275_p2 }
  0x28   :  { %283 = shalt.err (!%p280_p4)
}
  0x29   :  { %s284_s18 = scalar_lea.vmem %s46_s9, 384  ;;  %p289_p6 = scmp.lt.s32.totalorder %s46_s9, %s46_s9 }
  0x2a   :  { %p285_p5 = scmp.ne.s32.totalorder %s46_s9, %s284_s18  ;;  %p290_p7 = scmp.lt.s32.totalorder %s284_s18, %s284_s18 }
  0x2c   :  { %p291_p8 = por %p290_p7, %p289_p6 }
  0x2e   :  { %p292_p9 = pnand %p291_p8, %p285_p5 }
  0x30   :  { %295 = shalt.err (!%p292_p9)
}
  0x31   :  { %48 = dma.hbm_to_vmem [thread:$0]  %s418_s2, 384, %s46_s9, [#allocation6]  }
  0x32   :  { %318 = dma.done.wait [#allocation3], 96  }
  0x33   :  { %319 = vsyncadd [#allocation3], 4294967200 }
  0x34   :  { %320 = dma.done.wait [#allocation6], 768  }
  0x35   :  { %321 = vsyncadd [#allocation6], 4294966528  ;;  %v78_v0 = vlaneseq  ;;  %v327_v1 = vmov 0.0   ;;  %v65_v5 = vld [vmem:[#allocation5] sm:$0xff]  ;;  %v66_v6 = vld [vmem:[#allocation5 + $0x8] sm:$0xff]  ;;  %vm182_vm12 = vcmask 1040384  }
  0x36   :  { %64 = vst [vmem:[#allocation8] sm:$0x3f] %v327_v1  ;;  %v67_v8 = vld [vmem:[#allocation5 + $0x10] sm:$0xff]  ;;  %v68_v9 = vld [vmem:[#allocation7] sm:$0xff]  ;;  %v69_v10 = vld [vmem:[#allocation7 + $0x8] sm:$0xff]  ;;  %s329_s2 = smov [#allocation8]  }
  0x37   :  { %v386_v2 = vshrl.u32 %v78_v0, 7  ;;  %v73_v11 = vld [vmem:[#allocation2 + $0x1] ss:$2 sm:$0x7]  ;;  %v70_v12 = vld [vmem:[#allocation7 + $0x10] sm:$0xff]  ;;  %s214_s19 = sshll.u32 %s329_s2, 4  ;;  %s215_s19 = int_to_ptr.vmem [resolvable:$true] %s214_s19 }
  0x38   :  { %vm74_vm0 = vcmp.gt.f32.partialorder %v65_v5, 3.1415927  ;;  %vm75_vm1 = vcmp.gt.f32.partialorder %v66_v6, 3.1415927  ;;  %vm76_vm2 = vcmp.gt.f32.partialorder %v67_v8, 3.1415927  ;;  %p301_p11 = scmp.lt.s32.totalorder %s215_s19, %s215_s19 }
  0x39   :  { %v80_v3 = vsub.s32 0, %v386_v2  ;;  %v84_v4 = vsub.s32 1, %v386_v2  ;;  %v88_v7 = vsub.s32 2, %v386_v2  ;;  %vm108_vm3 = vcmp.gt.f32.partialorder %v68_v9, 3.1415927  ;;  %s296_s20 = scalar_lea.vmem %s215_s19, 96 }
  0x3a   :  { %vm109_vm4 = vcmp.gt.f32.partialorder %v69_v10, 3.1415927  ;;  %vm110_vm5 = vcmp.gt.f32.partialorder %v70_v12, 3.1415927  ;;  %v328_v56 = vmov 1983009808   ;;  %p297_p10 = scmp.ne.s32.totalorder %s215_s19, %s296_s20  ;;  %p302_p12 = scmp.lt.s32.totalorder %s296_s20, %s296_s20 }
  0x3b   :  { %v81_v13 = vrot.slane %v73_v11, %v80_v3  ;;  %v85_v14 = vrot.slane %v73_v11, %v84_v4  ;;  %v89_v15 = vrot.slane %v73_v11, %v88_v7  ;;  %v71_v54 = vld [vmem:[#allocation2] ss:$2 sm:$0x7]  ;;  %v191_v57 = vunpack.c.l.s4 %v328_v56 }
  0x3c   :  { %v154_v63 = vrot.slane %v71_v54, %v80_v3  ;;  %v158_v0 = vrot.slane %v71_v54, %v84_v4  ;;  %p303_p13 = por %p302_p12, %p301_p11 }
  0x3d   :  { %v93_v16 = vsub.f32 %v65_v5, %v81_v13  ;;  %v94_v17 = vsub.f32 %v66_v6, %v85_v14  ;;  %v111_v18 = vsub.f32 %v68_v9, %v81_v13  ;;  %v112_v19 = vsub.f32 %v69_v10, %v85_v14 }
  0x3e   :  { %v95_v20 = vsub.f32 %v67_v8, %v89_v15  ;;  %v113_v21 = vsub.f32 %v70_v12, %v89_v15  ;;  %p304_p0 = pnand %p303_p13, %p297_p10 }
  0x3f   :  { %v96_v22 = vsel %vm74_vm0, %v93_v16, %v65_v5  ;;  %v97_v23 = vsel %vm75_vm1, %v94_v17, %v66_v6  ;;  %v114_v24 = vsel %vm108_vm3, %v111_v18, %v68_v9  ;;  %v115_v25 = vsel %vm109_vm4, %v112_v19, %v69_v10 }
  0x40   :  { %v98_v26 = vsel %vm76_vm2, %v95_v20, %v67_v8  ;;  %vm99_vm6 = vcmp.lt.f32.partialorder %v96_v22, -3.1415927  ;;  %vm100_vm7 = vcmp.lt.f32.partialorder %v97_v23, -3.1415927  ;;  %v102_v27 = vadd.f32 %v96_v22, %v81_v13 }
  0x41   :  { %vm101_vm8 = vcmp.lt.f32.partialorder %v98_v26, -3.1415927  ;;  %v103_v28 = vadd.f32 %v97_v23, %v85_v14  ;;  %v104_v29 = vadd.f32 %v98_v26, %v89_v15  ;;  %v116_v30 = vsel %vm110_vm5, %v113_v21, %v70_v12 }
  0x42   :  { %v105_v31 = vsel %vm99_vm6, %v102_v27, %v96_v22  ;;  %vm117_vm9 = vcmp.lt.f32.partialorder %v114_v24, -3.1415927  ;;  %vm118_vm10 = vcmp.lt.f32.partialorder %v115_v25, -3.1415927  ;;  %vm119_vm11 = vcmp.lt.f32.partialorder %v116_v30, -3.1415927 }
  0x43   :  { %v106_v32 = vsel %vm100_vm7, %v103_v28, %v97_v23  ;;  %v120_v33 = vadd.f32 %v114_v24, %v81_v13  ;;  %v121_v34 = vadd.f32 %v115_v25, %v85_v14  ;;  %v107_v35 = vsel %vm101_vm8, %v104_v29, %v98_v26 }
  0x44   :  { %v122_v36 = vadd.f32 %v116_v30, %v89_v15  ;;  %v162_v5 = vrot.slane %v71_v54, %v88_v7  ;;  %v192_v6 = vunpack.c.0.s8 %v191_v57 }
  0x45   :  { %v123_v37 = vsel %vm117_vm9, %v120_v33, %v114_v24  ;;  %v124_v38 = vsel %vm118_vm10, %v121_v34, %v115_v25  ;;  %v172_v24 = vld [vmem:[#allocation8] sm:$0x3f] }
  0x46   :  { %v125_v39 = vsel %vm119_vm11, %v122_v36, %v116_v30  ;;  %v126_v40 = vsub.f32 %v105_v31, %v123_v37  ;;  %v127_v41 = vsub.f32 %v106_v32, %v124_v38  ;;  %v195_v14 = vsub.s32 %v192_v6, %v386_v2 }
  0x47   :  { %v128_v42 = vsub.f32 %v107_v35, %v125_v39 }
  0x48   :  { %v129_v43 = vmul.f32 %v126_v40, %v126_v40  ;;  %v130_v44 = vmul.f32 %v127_v41, %v127_v41 }
  0x49   :  { %v131_v45 = vmul.f32 %v128_v42, %v128_v42 }
  0x4a   :  { %v132_v46 = vrot.slane %v129_v43, 4  ;;  %v138_v47 = vrot.slane %v130_v44, 4 }
  0x4b   :  { %v144_v48 = vrot.slane %v131_v45, 4 }
  0x4c   :  { %v133_v49 = vadd.f32 %v132_v46, %v129_v43  ;;  %v139_v50 = vadd.f32 %v138_v47, %v130_v44 }
  0x4d   :  { %v145_v51 = vadd.f32 %v144_v48, %v131_v45 }
  0x4e   :  { %v134_v52 = vrot.slane %v133_v49, 2  ;;  %v140_v53 = vrot.slane %v139_v50, 2 }
  0x4f   :  { %v146_v55 = vrot.slane %v145_v51, 2 }
  0x50   :  { %v135_v58 = vadd.f32 %v134_v52, %v133_v49  ;;  %v141_v59 = vadd.f32 %v140_v53, %v139_v50 }
  0x51   :  { %v147_v60 = vadd.f32 %v146_v55, %v145_v51 }
  0x52   :  { %v136_v61 = vrot.slane %v135_v58, 1  ;;  %v142_v62 = vrot.slane %v141_v59, 1 }
  0x53   :  { %v148_v1 = vrot.slane %v147_v60, 1 }
  0x54   :  { %v137_v8 = vadd.f32 %v136_v61, %v135_v58  ;;  %v143_v9 = vadd.f32 %v142_v62, %v141_v59 }
  0x55   :  { %v149_v10 = vadd.f32 %v148_v1, %v147_v60 }
  0x56   :  { %v166_v11 = vmul.f32 %v154_v63, %v137_v8  ;;  %v167_v12 = vmul.f32 %v158_v0, %v143_v9 }
  0x57   :  { %v168_v13 = vmul.f32 %v162_v5, %v149_v10 }
  0x58   :  { %v169_v15 = vsub.f32 %v137_v8, %v166_v11  ;;  %v170_v16 = vsub.f32 %v143_v9, %v167_v12  ;;  %v176_v3 = vrot.slane %v166_v11, 7  ;;  %v177_v17 = vrot.slane %v167_v12, 7 }
  0x59   :  { %v171_v18 = vsub.f32 %v149_v10, %v168_v13  ;;  %v178_v4 = vrot.slane %v168_v13, 7 }
  0x5a   :  { %v183_v19 = vsel %vm182_vm12, %v169_v15, %v176_v3  ;;  %v184_v20 = vsel %vm182_vm12, %v170_v16, %v177_v17 }
  0x5b   :  { %v185_v21 = vsel %vm182_vm12, %v171_v18, %v178_v4  ;;  %v189_v7 = vcombine.low %v183_v19, %v184_v20 }
  0x5c   :  { %v203_v22 = vrot.slane %v185_v21, %v195_v14 }
  0x5d   :  { %v196_v23 = vrot.slane %v189_v7, %v195_v14 }
  0x5f   :  { %v204_v25 = vcombine.low %v196_v23, %v203_v22 }
  0x61   :  { %v206_v26 = vadd.f32 %v204_v25, %v172_v24 }
  0x63   :  { %207 = vst [vmem:[#allocation8] sm:$0x3f] %v206_v26 }
  0x64   :  { %307 = shalt.err (!%p304_p0)
}
  0x65   :  { %s308_s23 = scalar_lea.hbm %s419_s3, 96 }
  0x66   :  { %p309_p1 = scmp.ne.s32.totalorder %s419_s3, %s308_s23  ;;  %p312_p2 = scmp.lt.u32.totalorder %s308_s23, %s419_s3 }
  0x68   :  { %p314_p3 = pnand %p312_p2, %p309_p1 }
  0x6a   :  { %317 = shalt.err (!%p314_p3)
}
  0x6b   :  { %217 = dma.vmem_to_hbm [thread:$0]  %s215_s19, 96, %s419_s3, [#allocation4]  }
  0x6c   :  { %322 = dma.done.wait [#allocation4], 96  }
  0x6d   :  { %323 = vsyncadd [#allocation4], 4294967200 }
  0x6e   :  { %221 = vsyncpa [#allocation3], 1 }
  0x6f   :  { %222 = vsyncpa [#allocation6], 1 }
  0x70   :  { %223 = vsyncpa [#allocation4], 1 }

</bundles_post_ra>
